<compile_context>
chip_gen: v7x
topology: tpu7x:2x2x1
jax: 0.10.0
libtpu: 0.0.40
codegen_flags: <defaults>
</compile_context>

<pallas_src>
import math

import jax
import jax.numpy as jnp
from jax import lax
from jax.experimental import pallas as pl
from jax.experimental.pallas import tpu as pltpu


def _mfvi_linear_kernel(x_ref, wm_ref, wlv_ref, epsw_ref,
                        bm_ref, blv_ref, epsb_ref, o_ref, acc_ref):
    """One (n, k) grid step: sample a [tn, tk] weight tile, accumulate partial matmul."""
    k = pl.program_id(1)

    @pl.when(k == 0)
    def _():
        acc_ref[...] = jnp.zeros_like(acc_ref)

    # Reparameterization-trick sampling of this weight tile (VPU + EUP exp).
    # TODO(synk): eps_w could be generated on-chip via pltpu.prng_seed +
    # pltpu.stateful_normal to cut ~1/3 of the HBM weight stream; kept as an
    # input here to stay bit-comparable with the host-generated noise.
    std_w = jnp.exp(0.5 * wlv_ref[...])
    w_samp = wm_ref[...] + epsw_ref[...] * std_w          # [tn, tk], PyTorch layout

    # x[B, tk] . w_samp[tn, tk] contracted on K -> [B, tn]  (MXU, f32 accumulate).
    acc_ref[...] += lax.dot_general(
        x_ref[...], w_samp,
        dimension_numbers=(((1,), (1,)), ((), ())),
        preferred_element_type=jnp.float32)

    @pl.when(k == pl.num_programs(1) - 1)
    def _():
        # Sample bias once, at finalize (avoids redundant EUP work per K step).
        std_b = jnp.exp(0.5 * blv_ref[...])
        b_samp = bm_ref[...] + epsb_ref[...] * std_b       # [1, tn]
        o_ref[...] = (acc_ref[...] + b_samp).astype(o_ref.dtype)


def _pick_tile(dim, cap):
    """Largest multiple-of-128 divisor of `dim` that is <= cap; else the full dim."""
    if dim <= cap:
        return dim
    t = (cap // 128) * 128
    while t >= 128:
        if dim % t == 0:
            return t
        t -= 128
    return dim


def mfvi_linear_forward(x, weight_mean, weight_log_var, eps_w,
                        bias_mean, bias_log_var, eps_b,
                        *, tile_n=512, tile_k=512):
    """x: [B, K]; weight_*: [N, K] (PyTorch convention, NOT transposed); bias_*: [N]."""
    B, K = x.shape
    N = weight_mean.shape[0]

    tn = _pick_tile(N, tile_n)
    tk = _pick_tile(K, tile_k)
    grid = (N // tn, K // tk)

    # Only the tiny bias vectors get reshaped (N elements); no weight-sized copies.
    bm_2d = bias_mean.reshape(1, N)
    blv_2d = bias_log_var.reshape(1, N)
    epsb_2d = eps_b.reshape(1, N)

    # VMEM budget: 2-deep pipelining of input/output tiles + f32 accumulator,
    # plus headroom; floor 16 MiB, cap 48 MiB (leaves headroom on v7x's 64 MiB).
    elt = jnp.dtype(x.dtype).itemsize
    tile_in_bytes = elt * (B * tk + 3 * tn * tk + 3 * tn)
    tile_out_bytes = elt * B * tn
    acc_bytes = 4 * B * tn
    vmem_limit = int(min(max(2 * (tile_in_bytes + tile_out_bytes) + acc_bytes
                             + (8 << 20), 16 << 20), 48 << 20))

    grid_spec = pltpu.PrefetchScalarGridSpec(
        num_scalar_prefetch=0,
        grid=grid,
        in_specs=[
            pl.BlockSpec((B, tk), lambda n, k: (0, k)),    # x
            pl.BlockSpec((tn, tk), lambda n, k: (n, k)),   # weight_mean   [N, K]
            pl.BlockSpec((tn, tk), lambda n, k: (n, k)),   # weight_log_var[N, K]
            pl.BlockSpec((tn, tk), lambda n, k: (n, k)),   # eps_w         [N, K]
            pl.BlockSpec((1, tn), lambda n, k: (0, n)),    # bias_mean
            pl.BlockSpec((1, tn), lambda n, k: (0, n)),    # bias_log_var
            pl.BlockSpec((1, tn), lambda n, k: (0, n)),    # eps_b
        ],
        out_specs=pl.BlockSpec((B, tn), lambda n, k: (0, n)),
        scratch_shapes=[pltpu.VMEM((B, tn), jnp.float32)],
    )

    return pl.pallas_call(
        _mfvi_linear_kernel,
        out_shape=jax.ShapeDtypeStruct((B, N), x.dtype),
        grid_spec=grid_spec,
        compiler_params=pltpu.CompilerParams(
            dimension_semantics=("parallel", "arbitrary"),
            vmem_limit_bytes=vmem_limit),
    )(x, weight_mean, weight_log_var, eps_w, bm_2d, blv_2d, epsb_2d)


if __name__ == "__main__":
    # Small shapes consistent with an MFVI linear layer; tile_n/tile_k chosen to
    # exercise the (N, K) grid (grid = (3, 2)) even at this toy size.
    B, in_features, out_features = 8, 256, 384
    global_prior_b = 0.1  # only used by kl_divergence(); not in the forward path

    key = jax.random.PRNGKey(0)
    k_wm, k_bm, k_x, k_ew, k_eb = jax.random.split(key, 5)

    # Deterministic parameter init mirroring reset_parameters():
    # kaiming_uniform_(a=sqrt(5)) -> uniform(-bound, bound), bound = 1/sqrt(fan_in)
    bound_w = 1.0 / math.sqrt(in_features)
    weight_mean = jax.random.uniform(
        k_wm, (out_features, in_features), jnp.float32,
        minval=-bound_w, maxval=bound_w)
    weight_log_var = jnp.full((out_features, in_features), -6.0, jnp.float32)
    bound_b = 1.0 / math.sqrt(in_features)
    bias_mean = jax.random.uniform(
        k_bm, (out_features,), jnp.float32, minval=-bound_b, maxval=bound_b)
    bias_log_var = jnp.full((out_features,), -6.0, jnp.float32)

    # Inputs and reparameterization noise (eps ~ N(0,1), as randn_like).
    x = jax.random.normal(k_x, (B, in_features), jnp.float32)
    eps_w = jax.random.normal(k_ew, (out_features, in_features), jnp.float32)
    eps_b = jax.random.normal(k_eb, (out_features,), jnp.float32)

    out = mfvi_linear_forward(
        x, weight_mean, weight_log_var, eps_w, bias_mean, bias_log_var, eps_b,
        tile_n=128, tile_k=128)
    out = jax.block_until_ready(out)

    # Pure-JAX reference check of forward semantics.
    w_samp = weight_mean + eps_w * jnp.exp(0.5 * weight_log_var)
    b_samp = bias_mean + eps_b * jnp.exp(0.5 * bias_log_var)
    ref = x @ w_samp.T + b_samp
    assert out.shape == (B, out_features)
    assert jnp.allclose(out, ref, atol=2e-5, rtol=1e-5)

    # TODO(synk): kl_divergence()/set_prior_from_posterior() are training-time
    # utilities outside the forward pass and are not implemented as kernels.
    print("KERNEL_OK")
</pallas_src>

<mosaic_0001>
module attributes {stable_mosaic.version = 11 : i64} {
  func.func @_mfvi_linear_kernel(%arg0: i32, %arg1: i32, %arg2: memref<8x128xf32, #tpu.memory_space<vmem>>, %arg3: memref<128x128xf32, #tpu.memory_space<vmem>>, %arg4: memref<128x128xf32, #tpu.memory_space<vmem>>, %arg5: memref<128x128xf32, #tpu.memory_space<vmem>>, %arg6: memref<1x128xf32, #tpu.memory_space<vmem>>, %arg7: memref<1x128xf32, #tpu.memory_space<vmem>>, %arg8: memref<1x128xf32, #tpu.memory_space<vmem>>, %arg9: memref<8x128xf32, #tpu.memory_space<vmem>>, %arg10: memref<8x128xf32, #tpu.memory_space<vmem>>) attributes {dimension_semantics = [#tpu.dimension_semantics<parallel>, #tpu.dimension_semantics<arbitrary>], iteration_bounds = array<i64: 3, 2>, scalar_prefetch = 0 : i64, scratch_operands = 1 : i64, tpu.core_type = #tpu.core_type<tc>, window_params = [{transform_indices = @transform_0, window_bounds = array<i64: 8, 128>}, {transform_indices = @transform_1, window_bounds = array<i64: 128, 128>}, {transform_indices = @transform_2, window_bounds = array<i64: 128, 128>}, {transform_indices = @transform_3, window_bounds = array<i64: 128, 128>}, {transform_indices = @transform_4, window_bounds = array<i64: 1, 128>}, {transform_indices = @transform_5, window_bounds = array<i64: 1, 128>}, {transform_indices = @transform_6, window_bounds = array<i64: 1, 128>}, {transform_indices = @transform_7, window_bounds = array<i64: 8, 128>}]} {
    %c0_i32 = arith.constant 0 : i32
    %0 = arith.cmpi eq, %arg1, %c0_i32 : i32
    %1 = arith.extui %0 : i1 to i32
    %c0_i32_0 = arith.constant 0 : i32
    %2 = arith.cmpi ne, %1, %c0_i32_0 : i32
    scf.if %2 {
      %cst_14 = arith.constant 0.000000e+00 : f32
      %19 = vector.broadcast %cst_14 : f32 to vector<8x128xf32>
      %c0_15 = arith.constant 0 : index
      %c0_16 = arith.constant 0 : index
      %20 = vector.load %arg10[%c0_15, %c0_16] : memref<8x128xf32, #tpu.memory_space<vmem>>, vector<8x128xf32>
      tpu.vector_store %arg10[%c0_15, %c0_16], %19 {strides = array<i32>} : memref<8x128xf32, #tpu.memory_space<vmem>>, vector<8x128xf32>,
    } else {
    }
    %c0 = arith.constant 0 : index
    %c0_1 = arith.constant 0 : index
    %3 = vector.load %arg4[%c0, %c0_1] : memref<128x128xf32, #tpu.memory_space<vmem>>, vector<128x128xf32>
    %cst = arith.constant 5.000000e-01 : f32
    %4 = vector.broadcast %cst : f32 to vector<128x128xf32>
    %5 = arith.mulf %4, %3 : vector<128x128xf32>
    %6 = math.exp %5 : vector<128x128xf32>
    %c0_2 = arith.constant 0 : index
    %c0_3 = arith.constant 0 : index
    %7 = vector.load %arg3[%c0_2, %c0_3] : memref<128x128xf32, #tpu.memory_space<vmem>>, vector<128x128xf32>
    %c0_4 = arith.constant 0 : index
    %c0_5 = arith.constant 0 : index
    %8 = vector.load %arg5[%c0_4, %c0_5] : memref<128x128xf32, #tpu.memory_space<vmem>>, vector<128x128xf32>
    %9 = arith.mulf %8, %6 : vector<128x128xf32>
    %10 = arith.addf %7, %9 : vector<128x128xf32>
    %c0_6 = arith.constant 0 : index
    %c0_7 = arith.constant 0 : index
    %11 = vector.load %arg10[%c0_6, %c0_7] : memref<8x128xf32, #tpu.memory_space<vmem>>, vector<8x128xf32>
    %c0_8 = arith.constant 0 : index
    %c0_9 = arith.constant 0 : index
    %12 = vector.load %arg2[%c0_8, %c0_9] : memref<8x128xf32, #tpu.memory_space<vmem>>, vector<8x128xf32>
    %cst_10 = arith.constant dense<0.000000e+00> : vector<8x128xf32>
    %13 = tpu.matmul %12, %10, %cst_10 {dimension_numbers = #tpu.dot_dimension_numbers<[1], [1], [0], [0], [0, 0, 1, 0], [], []>} : vector<8x128xf32>, vector<128x128xf32>, vector<8x128xf32> -> vector<8x128xf32>
    %14 = arith.addf %11, %13 : vector<8x128xf32>
    %c0_11 = arith.constant 0 : index
    %c0_12 = arith.constant 0 : index
    %15 = vector.load %arg10[%c0_11, %c0_12] : memref<8x128xf32, #tpu.memory_space<vmem>>, vector<8x128xf32>
    tpu.vector_store %arg10[%c0_11, %c0_12], %14 {strides = array<i32>} : memref<8x128xf32, #tpu.memory_space<vmem>>, vector<8x128xf32>,
    %c1_i32 = arith.constant 1 : i32
    %16 = arith.cmpi eq, %arg1, %c1_i32 : i32
    %17 = arith.extui %16 : i1 to i32
    %c0_i32_13 = arith.constant 0 : i32
    %18 = arith.cmpi ne, %17, %c0_i32_13 : i32
    scf.if %18 {
      %c0_14 = arith.constant 0 : index
      %c0_15 = arith.constant 0 : index
      %19 = vector.load %arg7[%c0_14, %c0_15] : memref<1x128xf32, #tpu.memory_space<vmem>>, vector<1x128xf32>
      %cst_16 = arith.constant 5.000000e-01 : f32
      %20 = vector.broadcast %cst_16 : f32 to vector<1x128xf32>
      %21 = arith.mulf %20, %19 : vector<1x128xf32>
      %22 = math.exp %21 : vector<1x128xf32>
      %c0_17 = arith.constant 0 : index
      %c0_18 = arith.constant 0 : index
      %23 = vector.load %arg6[%c0_17, %c0_18] : memref<1x128xf32, #tpu.memory_space<vmem>>, vector<1x128xf32>
      %c0_19 = arith.constant 0 : index
      %c0_20 = arith.constant 0 : index
      %24 = vector.load %arg8[%c0_19, %c0_20] : memref<1x128xf32, #tpu.memory_space<vmem>>, vector<1x128xf32>
      %25 = arith.mulf %24, %22 : vector<1x128xf32>
      %26 = arith.addf %23, %25 : vector<1x128xf32>
      %c0_21 = arith.constant 0 : index
      %c0_22 = arith.constant 0 : index
      %27 = vector.load %arg10[%c0_21, %c0_22] : memref<8x128xf32, #tpu.memory_space<vmem>>, vector<8x128xf32>
      %28 = vector.broadcast %26 : vector<1x128xf32> to vector<8x128xf32>
      %29 = arith.addf %27, %28 : vector<8x128xf32>
      %c0_23 = arith.constant 0 : index
      %c0_24 = arith.constant 0 : index
      %30 = vector.load %arg9[%c0_23, %c0_24] : memref<8x128xf32, #tpu.memory_space<vmem>>, vector<8x128xf32>
      tpu.vector_store %arg9[%c0_23, %c0_24], %29 {strides = array<i32>} : memref<8x128xf32, #tpu.memory_space<vmem>>, vector<8x128xf32>,
    } else {
    }
    return
  }
  func.func @transform_0(%arg0: i32, %arg1: i32) -> (i32, i32) {
    %c0_i32 = arith.constant 0 : i32
    %c0_i32_0 = arith.constant 0 : i32
    return %c0_i32, %arg1 : i32, i32
  }
  func.func @transform_1(%arg0: i32, %arg1: i32) -> (i32, i32) {
    %c0_i32 = arith.constant 0 : i32
    return %arg0, %arg1 : i32, i32
  }
  func.func @transform_2(%arg0: i32, %arg1: i32) -> (i32, i32) {
    %c0_i32 = arith.constant 0 : i32
    return %arg0, %arg1 : i32, i32
  }
  func.func @transform_3(%arg0: i32, %arg1: i32) -> (i32, i32) {
    %c0_i32 = arith.constant 0 : i32
    return %arg0, %arg1 : i32, i32
  }
  func.func @transform_4(%arg0: i32, %arg1: i32) -> (i32, i32) {
    %c0_i32 = arith.constant 0 : i32
    %c0_i32_0 = arith.constant 0 : i32
    return %c0_i32, %arg0 : i32, i32
  }
  func.func @transform_5(%arg0: i32, %arg1: i32) -> (i32, i32) {
    %c0_i32 = arith.constant 0 : i32
    %c0_i32_0 = arith.constant 0 : i32
    return %c0_i32, %arg0 : i32, i32
  }
  func.func @transform_6(%arg0: i32, %arg1: i32) -> (i32, i32) {
    %c0_i32 = arith.constant 0 : i32
    %c0_i32_0 = arith.constant 0 : i32
    return %c0_i32, %arg0 : i32, i32
  }
  func.func @transform_7(%arg0: i32, %arg1: i32) -> (i32, i32) {
    %c0_i32 = arith.constant 0 : i32
    %c0_i32_0 = arith.constant 0 : i32
    return %c0_i32, %arg0 : i32, i32
  }
}

</mosaic_0001>

<bundles_post_ra>
// kernel: tpu_custom_call.1
= control target key start
LH: loop header
LB: loop body
LE: loop exit
PB: predicated region body
PF: predicated region fallthrough
CT: control target
= control target key end

     0   :  { %s2046_s0 = inlined_call_operand.hbm [shape: f32[8,256], index: 0, kind: input, shape index: {}]   ;;  %s2047_s1 = inlined_call_operand.hbm [shape: f32[384,256], index: 1, kind: input, shape index: {}]   ;;  %s2048_s2 = inlined_call_operand.hbm [shape: f32[384,256], index: 2, kind: input, shape index: {}]   ;;  %s2049_s3 = inlined_call_operand.hbm [shape: f32[384,256], index: 3, kind: input, shape index: {}]   ;;  %s2050_s4 = inlined_call_operand.vmem [shape: f32[1,384], index: 4, kind: input, shape index: {}]   ;;  %s2051_s5 = inlined_call_operand.vmem [shape: f32[1,384], index: 5, kind: input, shape index: {}]   ;;  %s2052_s6 = inlined_call_operand.vmem [shape: f32[1,384], index: 6, kind: input, shape index: {}]   ;;  %s2053_s7 = inlined_call_operand.hbm [shape: f32[8,384], index: 7, kind: output, shape index: {}]  }
   0x1   :  { %2080 = sst [smem:[#allocation30_spill]] %s2047_s1 }
   0x2   :  { %2081 = sst [smem:[#allocation31_spill]] %s2050_s4 }
   0x3   :  { %2082 = sst [smem:[#allocation32_spill]] %s2051_s5 }
   0x4   :  { %2083 = sst [smem:[#allocation33_spill]] %s2052_s6 }
   0x5   :  { %2084 = sst [smem:[#allocation34_spill]] %s2053_s7 }
   0x6   :  { %12 = vsyncpa [#allocation4], 0 }
   0x7   :  { %14 = vsyncpa [#allocation4 + $0x1], 0 }
   0x8   :  { %15 = vsyncpa [#allocation7], 0 }
   0x9   :  { %17 = vsyncpa [#allocation7 + $0x1], 0 }
   0xa   :  { %18 = vsyncpa [#allocation10], 0 }
   0xb   :  { %20 = vsyncpa [#allocation10 + $0x1], 0 }
   0xc   :  { %21 = vsyncpa [#allocation5], 0 }
   0xd   :  { %23 = vsyncpa [#allocation5 + $0x1], 0  ;;  %s1521_s24 = smov 0   ;;  %s1523_s25 = smov 0  }
   0xe   :  { %s1525_s26 = smov 0   ;;  %s1527_s27 = smov 0  }
   0xf   :  { %s1529_s28 = smov 0   ;;  %s1531_s29 = smov 0  }
  0x10   :  { %s1533_s30 = smov 0   ;;  %s1535_s8 = smov 0  }
  0x11   :  { %s1537_s9 = smov 0   ;;  %s1539_s10 = smov 0  }
  0x12   :  { %s1541_s11 = smov 0   ;;  %s1543_s12 = smov 0  }
  0x13   :  { %s1545_s13 = smov 0   ;;  %s1547_s14 = smov 0  }
  0x14 LB: > { %2085 = sst [smem:[#allocation16_spill]] %s1423_s26  ;;  %p2057_p0 = scmp.eq.s32.totalorder %s1467_s14, 0  ;;  %s1467_s14 = sphi %s1547_s14, %s29_s14   ;;  %s1463_s13 = sphi %s1545_s13, %s2150_s13   ;;  %s1459_s12 = sphi %s1543_s12, %s2149_s12   ;;  %s1455_s11 = sphi %s1541_s11, %s2148_s11   ;;  %s1451_s10 = sphi %s1539_s10, %s2147_s10   ;;  %s1447_s9 = sphi %s1537_s9, %s2146_s9   ;;  %s1443_s8 = sphi %s1535_s8, %s2155_s8   ;;  %s1439_s30 = sphi %s1533_s30, %s2144_s30   ;;  %s1435_s29 = sphi %s1531_s29, %s2154_s29   ;;  %s1431_s28 = sphi %s1529_s28, %s2153_s28   ;;  %s1427_s27 = sphi %s1527_s27, %s2142_s27   ;;  %s1423_s26 = sphi %s1525_s26, %s2141_s26   ;;  %s1419_s25 = sphi %s1523_s25, %s2152_s25   ;;  %s1415_s24 = sphi %s1521_s24, %s2151_s24  }
  0x15   : > { %2086 = sst [smem:[#allocation17_spill]] %s1431_s28  ;;  %p83_p1 = scmp.ne.s32.totalorder %s1435_s29, %s1431_s28 }
  0x16   : > { %2087 = sst [smem:[#allocation18_spill]] %s1443_s8  ;;  %p2056_p2 = scmp.lt.s32.totalorder %s1467_s14, 6 }
  0x17   : > { %2088 = sst [smem:[#allocation19_spill]] %s1447_s9  ;;  %p85_p3 = por %p83_p1, %p2057_p0 }
  0x18   : > { %2089 = sst [smem:[#allocation20_spill]] %s1451_s10  ;;  %s291_s17 = sand.u32 1, %s1467_s14  }
  0x19   : > { %2090 = sst [smem:[#allocation21_spill]] %s1455_s11  ;;  %s2055_s18 = sand.u32 1, %s1435_s29  }
  0x1a   : > { %2091 = sst [smem:[#allocation22_spill]] %s1459_s12  ;;  %s1603_s19 = sshll.u32 %s2055_s18, 7 }
  0x1b   : > { %2092 = sst [smem:[#allocation23_spill]] %s1463_s13  ;;  %s932_s20 = sshll.u32 %s1463_s13, 5 }
  0x1c   : > { %s301_s21 = sadd.s32 %s1459_s12, %s932_s20  ;;  %s295_s23 = scalar_lea.vmem [#allocation6], %s1603_s19 }
  0x1d   : > { %s1607_s22 = sshll.u32 %s301_s21, 7  ;;  %s304_s15 = sshll.u32 %s295_s23, 4  ;;  %s1616_s15 = int_to_ptr.vmem [resolvable:$true] %s304_s15 }
  0x1e   : > { %s2093_s1 = sld [smem:[#allocation30_spill]]  ;;  %p1620_p4 = pnand %p2056_p2, %p85_p3 }
  0x1f   : > { %s1625_s20 = scalar_lea.sflag [#allocation7], %s291_s17 }
  0x20   : > { %s2094_s18 = scalar_select %p1620_p4, 1, 0 }
  0x21   : > { %p1631_p7 = pneg %p1620_p4 }
  0x24   : > { %s1614_s16 = scalar_lea.hbm %s2093_s1, %s1607_s22  ;;  %s1198_s6 = scalar_lea.hbm %s2093_s1, 12288 }
  0x25   : > { %s1193_s21 = scalar_lea.hbm %s1614_s16, 2048  ;;  %p1199_p10 = scmp.lt.u32.totalorder %s1614_s16, %s2093_s1 }
  0x26   : > { %p1194_p6 = scmp.ne.s32.totalorder %s1614_s16, %s1193_s21  ;;  %p1200_p11 = scmp.lt.u32.totalorder %s1198_s6, %s1193_s21 }
  0x27   : > { %p1202_p13 = scmp.lt.u32.totalorder %s1193_s21, %s1614_s16 }
  0x28   : > { %p1196_p8 = pnand %p1631_p7, %p1194_p6  ;;  %p1201_p12 = por %p1200_p11, %p1199_p10 }
  0x2a   : > { %p1197_p9 = pneg %p1196_p8  ;;  %p1203_p1 = por %p1202_p13, %p1201_p12 }
  0x2c   : > { %p1204_p3 = pnand %p1203_p1, %p1197_p9 }
  0x2e   : > { %1207 = shalt.err (!%p1204_p3)
}
  0x2f   : > { %s1208_s17 = scalar_lea.vmem %s1616_s15, 2048  ;;  %s1469_s10 = smov [#allocation6]  }
  0x30   : > { %p1209_p6 = scmp.ne.s32.totalorder %s1616_s15, %s1208_s17  ;;  %s1213_s23 = sshll.u32 %s1469_s10, 4  ;;  %s1214_s23 = int_to_ptr.vmem [resolvable:$false] %s1213_s23 }
  0x31   : > { %s1215_s4 = scalar_lea.vmem %s1214_s23, 4096  ;;  %p1216_p0 = scmp.lt.s32.totalorder %s1616_s15, %s1214_s23 }
  0x32   : > { %p1211_p8 = pnand %p1209_p6, %p1631_p7  ;;  %p1217_p5 = scmp.lt.s32.totalorder %s1215_s4, %s1208_s17 }
  0x34   : > { %p1212_p2 = pneg %p1211_p8  ;;  %p1218_p10 = por %p1217_p5, %p1216_p0 }
  0x36   : > { %p1219_p11 = pnand %p1218_p10, %p1212_p2 }
  0x38   : > { %1222 = shalt.err (!%p1219_p11)
}
  0x39   : > { %s2058_s5 = smov 256   ;;  %s2060_s6 = smov 128  }
  0x3a   : > { %s2062_s21 = smov 8   ;;  %p376_p0 = scmp.lt.s32.totalorder %s1467_s14, 7 }
  0x3b   : > { %1027 = dma.hbm_to_vmem [thread:$0]  (!%p1620_p4), %s1614_s16, 2048, %s1616_s15, %s1625_s20, %s2058_s5, %s2060_s6, %s2062_s21  }
  0x3c   : > { %p2096_p2 = scmp.ge.s32.totalorder %s1467_s14, 1  ;;  %s1666_s10 = sadd.s32 4294967295, %s1467_s14  }
  0x3d   : > { %s903_s23 = sadd.s32 4294967294, %s1467_s14   ;;  %s38_s4 = sadd.s32 1, %s1459_s12 }
  0x3e   : > { %p1661_p5 = pnand %p2096_p2, %p376_p0  ;;  %s48_s1 = sadd.s32 1, %s1447_s9 }
  0x3f   : > { %p39_p9 = scmp.ge.s32.totalorder %s38_s4, 2  ;;  %p55_p12 = scmp.ne.s32.totalorder %s1447_s9, %s1443_s8 }
  0x40   : > { %s2097_s17 = scalar_select %p1661_p5, 1, 0 }
  0x41   : > { %p61_p13 = scmp.ne.s32.totalorder %s1443_s8, %s1439_s30  ;;  %p62_p1 = scmp.eq.s32.totalorder %s1666_s10, 0 }
  0x42   : > { %s2157_s4 = smov (%p39_p9, %s38_s4), 0  ;;  %s2099_s15 = sadd.s32 1, %s1463_s13 }
  0x43   : > { %2098 = sst [smem:[#allocation24_spill]] %s2157_s4  ;;  %s2159_s15 = smov (!%p39_p9, %s2099_s15), %s1463_s13 }
  0x44   : > { %s45_s16 = ssub.s32 %s1459_s12, %s2157_s4  ;;  %p2100_p3 = scmp.eq.s32.totalorder %s1467_s14, 0 }
  0x45   : > { %p43_p8 = scmp.ge.s32.totalorder %s2159_s15, 3  ;;  %p46_p10 = scmp.eq.s32.totalorder %s45_s16, 0 }
  0x46   : > { %p1685_p6 = por %p2100_p3, %p55_p12  ;;  %p1689_p11 = por %p62_p1, %p61_p13 }
  0x47   : > { %p89_p0 = scmp.ne.s32.totalorder %s1431_s28, %s1427_s27  ;;  %s2161_s15 = smov (%p43_p8, %s2159_s15), 0 }
  0x48   : > { %s2102_s30 = scalar_select %p1689_p11, 1, 0 }
  0x49   : > { %2104 = sst [smem:[#allocation26_spill]] %s2161_s15  ;;  %s71_s21 = ssub.s32 %s1463_s13, %s2161_s15 }
  0x4a   : > { %2103 = sst [smem:[#allocation25_spill]] %s2102_s30  ;;  %p1702_p2 = por %p89_p0, %p62_p1 }
  0x4b   : > { %s1698_s6 = scalar_select %p46_p10, %s1447_s9, %s48_s1  }
  0x4c   : > { %s2106_s4 = scalar_select %p1702_p2, 1, 0 }
  0x4d   : > { %2105 = sst [smem:[#allocation27_spill]] %s1698_s6  ;;  %s73_s11 = sor.u32 %s71_s21, %s45_s16 }
  0x4e   : > { %p234_p9 = scmp.eq.s32.totalorder %s71_s21, 0  ;;  %p74_p12 = scmp.eq.s32.totalorder %s73_s11, 0 }
  0x4f   : > { %s236_s8 = sadd.s32 1, %s1423_s26  ;;  %s2108_s27 = sadd.s32 1, %s1435_s29 }
  0x50   : > { %s1708_s30 = scalar_select %p234_p9, %s1423_s26, %s236_s8  }
  0x51   : > { %s1713_s28 = scalar_select %p74_p12, %s1435_s29, %s2108_s27  }
  0x52   : > { %2107 = sst [smem:[#allocation28_spill]] %s1708_s30  ;;  %p246_p13 = scmp.ne.s32.totalorder %s1423_s26, %s1419_s25 }
  0x53   : > { %2109 = sst [smem:[#allocation29_spill]] %s1713_s28  ;;  %p247_p3 = scmp.eq.s32.totalorder %s1666_s10, 5 }
  0x54   : > { %p252_p8 = scmp.ne.s32.totalorder %s1419_s25, %s1415_s24  ;;  %p253_p10 = scmp.eq.s32.totalorder %s903_s23, 5 }
  0x55   : > { %p1720_p1 = por %p247_p3, %p246_p13  ;;  %s273_s16 = sand.u32 1, %s1447_s9  }
  0x56   : > { %p1725_p0 = por %p253_p10, %p252_p8  ;;  %s906_s21 = sshll.u32 %s273_s16, 3 }
  0x57   : > { %s2110_s1 = scalar_select %p1720_p1, 1, 0 }
  0x58   : > { %s2111_s11 = scalar_select %p1725_p0, 1, 0 }
  0x59   : > { %s907_s8 = sshll.u32 %s1459_s12, 7  ;;  %s277_s23 = scalar_lea.vmem [#allocation3], %s906_s21 }
  0x5a   : > { %s1733_s27 = scalar_lea.hbm %s2046_s0, %s907_s8  ;;  %s284_s6 = sshll.u32 %s277_s23, 4  ;;  %s1743_s6 = int_to_ptr.vmem [resolvable:$true] %s284_s6 }
  0x5b   : > { %p2112_p9 = scmp.lt.s32.totalorder %s1467_s14, 6  ;;  %s1749_s15 = scalar_lea.hbm %s2048_s2, %s1607_s22 }
  0x5c   : > { %s274_s8 = scalar_lea.sflag [#allocation4], %s273_s16  ;;  %s1223_s28 = scalar_lea.hbm %s1733_s27, 128 }
  0x5d   : > { %p1739_p12 = pnand %p2112_p9, %p1685_p6  ;;  %p1224_p13 = scmp.ne.s32.totalorder %s1733_s27, %s1223_s28 }
  0x5e   : > { %s1228_s23 = scalar_lea.hbm %s2046_s0, 256  ;;  %p1229_p10 = scmp.lt.u32.totalorder %s1733_s27, %s2046_s0 }
  0x5f   : > { %p1225_p3 = pneg %p1739_p12  ;;  %p1230_p9 = scmp.lt.u32.totalorder %s1228_s23, %s1223_s28 }
  0x60   : > { %p1232_p1 = scmp.lt.u32.totalorder %s1223_s28, %s1733_s27 }
  0x61   : > { %p1226_p6 = pnand %p1225_p3, %p1224_p13  ;;  %p1231_p0 = por %p1230_p9, %p1229_p10 }
  0x63   : > { %p1227_p8 = pneg %p1226_p6  ;;  %p1233_p2 = por %p1232_p1, %p1231_p0 }
  0x65   : > { %p1234_p11 = pnand %p1233_p2, %p1227_p8 }
  0x67   : > { %1237 = shalt.err (!%p1234_p11)
}
  0x68   : > { %s1238_s12 = scalar_lea.vmem %s1743_s6, 128  ;;  %s1473_s16 = smov [#allocation3]  }
  0x69   : > { %p1239_p13 = scmp.ne.s32.totalorder %s1743_s6, %s1238_s12  ;;  %s1243_s13 = sshll.u32 %s1473_s16, 4  ;;  %s1244_s13 = int_to_ptr.vmem [resolvable:$false] %s1243_s13 }
  0x6a   : > { %s1245_s26 = scalar_lea.vmem %s1244_s13, 256  ;;  %p1246_p4 = scmp.lt.s32.totalorder %s1743_s6, %s1244_s13 }
  0x6b   : > { %p1241_p6 = pnand %p1239_p13, %p1225_p3  ;;  %p1247_p10 = scmp.lt.s32.totalorder %s1245_s26, %s1238_s12 }
  0x6d   : > { %p1242_p5 = pneg %p1241_p6  ;;  %p1248_p9 = por %p1247_p10, %p1246_p4 }
  0x6f   : > { %p1249_p1 = pnand %p1248_p9, %p1242_p5 }
  0x71   : > { %1252 = shalt.err (!%p1249_p1)
}
  0x72   : > { %1024 = dma.hbm_to_vmem [thread:$0]  (!%p1739_p12), %s1733_s27, 128, %s1743_s6, %s274_s8  }
  0x73   : > { %s318_s28 = scalar_lea.vmem [#allocation8], %s1603_s19  ;;  %s1253_s5 = scalar_lea.hbm %s1749_s15, 2048 }
  0x74   : > { %s327_s30 = sshll.u32 %s318_s28, 4  ;;  %p1254_p11 = scmp.ne.s32.totalorder %s1749_s15, %s1253_s5  ;;  %s1777_s30 = int_to_ptr.vmem [resolvable:$true] %s327_s30 }
  0x75   : > { %s1258_s23 = scalar_lea.hbm %s2048_s2, 12288  ;;  %p1259_p2 = scmp.lt.u32.totalorder %s1749_s15, %s2048_s2 }
  0x76   : > { %p1256_p4 = pnand %p1254_p11, %p1631_p7  ;;  %p1260_p0 = scmp.lt.u32.totalorder %s1258_s23, %s1253_s5 }
  0x77   : > { %p1262_p12 = scmp.lt.u32.totalorder %s1253_s5, %s1749_s15 }
  0x78   : > { %p1257_p5 = pneg %p1256_p4  ;;  %p1261_p3 = por %p1260_p0, %p1259_p2 }
  0x7a   : > { %p1263_p8 = por %p1262_p12, %p1261_p3 }
  0x7c   : > { %p1264_p13 = pnand %p1263_p8, %p1257_p5 }
  0x7e   : > { %1267 = shalt.err (!%p1264_p13)
}
  0x7f   : > { %s1268_s6 = scalar_lea.vmem %s1777_s30, 2048  ;;  %s1474_s27 = smov [#allocation8]  }
  0x80   : > { %p1269_p6 = scmp.ne.s32.totalorder %s1777_s30, %s1268_s6  ;;  %s1273_s8 = sshll.u32 %s1474_s27, 4  ;;  %s1274_s8 = int_to_ptr.vmem [resolvable:$false] %s1273_s8 }
  0x81   : > { %s1275_s13 = scalar_lea.vmem %s1274_s8, 4096  ;;  %p1276_p1 = scmp.lt.s32.totalorder %s1777_s30, %s1274_s8 }
  0x82   : > { %p1271_p10 = pnand %p1269_p6, %p1631_p7  ;;  %p1277_p11 = scmp.lt.s32.totalorder %s1275_s13, %s1268_s6 }
  0x84   : > { %p1272_p9 = pneg %p1271_p10  ;;  %p1278_p4 = por %p1277_p11, %p1276_p1 }
  0x86   : > { %p1279_p2 = pnand %p1278_p4, %p1272_p9 }
  0x88   : > { %1282 = shalt.err (!%p1279_p2)
}
  0x89   : > { %p2114_p5 = scmp.ne.s32.totalorder %s2094_s18, 0  ;;  %s2115_s26 = smov 8  }
  0x8a   : > { %s2116_s28 = smov 128   ;;  %s2117_s5 = smov 256  }
  0x8b   : > { %1030 = dma.hbm_to_vmem [thread:$0]  (!%p2114_p5), %s1749_s15, 2048, %s1777_s30, %s1625_s20, %s2117_s5, %s2116_s28, %s2115_s26  }
  0x8c   : > { %s1808_s23 = scalar_lea.hbm %s2049_s3, %s1607_s22  ;;  %s341_s12 = scalar_lea.vmem [#allocation9], %s1603_s19 }
  0x8d   : > { %s350_s16 = sshll.u32 %s341_s12, 4  ;;  %s2118_s6 = sand.u32 1, %s1435_s29   ;;  %s1811_s16 = int_to_ptr.vmem [resolvable:$true] %s350_s16 }
  0x8e   : > { %s1815_s27 = scalar_lea.sflag [#allocation10], %s2118_s6  ;;  %s1283_s8 = scalar_lea.hbm %s1808_s23, 2048 }
  0x8f   : > { %p1284_p0 = scmp.ne.s32.totalorder %s1808_s23, %s1283_s8  ;;  %s1288_s22 = scalar_lea.hbm %s2049_s3, 12288 }
  0x90   : > { %p1289_p8 = scmp.lt.u32.totalorder %s1808_s23, %s2049_s3  ;;  %p1290_p13 = scmp.lt.u32.totalorder %s1288_s22, %s1283_s8 }
  0x91   : > { %p1286_p3 = pnand %p1284_p0, %p1631_p7  ;;  %p1292_p10 = scmp.lt.u32.totalorder %s1283_s8, %s1808_s23 }
  0x92   : > { %p1291_p6 = por %p1290_p13, %p1289_p8 }
  0x93   : > { %p1287_p12 = pneg %p1286_p3 }
  0x94   : > { %p1293_p9 = por %p1292_p10, %p1291_p6 }
  0x96   : > { %p1294_p1 = pnand %p1293_p9, %p1287_p12 }
  0x98   : > { %1297 = shalt.err (!%p1294_p1)
}
  0x99   : > { %s1298_s19 = scalar_lea.vmem %s1811_s16, 2048  ;;  %s1475_s21 = smov [#allocation9]  }
  0x9a   : > { %p1299_p11 = scmp.ne.s32.totalorder %s1811_s16, %s1298_s19  ;;  %s1303_s9 = sshll.u32 %s1475_s21, 4  ;;  %s1304_s9 = int_to_ptr.vmem [resolvable:$false] %s1303_s9 }
  0x9b   : > { %s1305_s12 = scalar_lea.vmem %s1304_s9, 4096  ;;  %p1306_p0 = scmp.lt.s32.totalorder %s1811_s16, %s1304_s9 }
  0x9c   : > { %p1301_p4 = pnand %p1299_p11, %p1631_p7  ;;  %p1307_p3 = scmp.lt.s32.totalorder %s1305_s12, %s1298_s19 }
  0x9e   : > { %p1302_p2 = pneg %p1301_p4  ;;  %p1308_p8 = por %p1307_p3, %p1306_p0 }
  0xa0   : > { %p1309_p13 = pnand %p1308_p8, %p1302_p2 }
  0xa2   : > { %1312 = shalt.err (!%p1309_p13)
}
  0xa3   : > { %1033 = dma.hbm_to_vmem [thread:$0]  (!%p2114_p5), %s1808_s23, 2048, %s1811_s16, %s1815_s27, %s2117_s5, %s2116_s28, %s2115_s26  }
  0xa4   : > { %p2119_p7 = scmp.ne.s32.totalorder %s2097_s17, 0 }
  0xa5   : > { %s2120_s7 = sld [smem:[#allocation18_spill]] (!%p2119_p7)  ;;  %s2121_s6 = sld [smem:[#allocation25_spill]] (!%p2119_p7) }
  0xa6   : > { %380 = sbr.rel (%p2119_p7) target bundleno = 545 (0x221), region = 48 }
  0xab   : > { %s382_s8 = sand.u32 (!%p2119_p7), 1, %s2120_s7   ;;  %p2122_p12 = scmp.ne.s32.totalorder (!%p2119_p7), %s2121_s6, 0 }
  0xac   : > { %s1845_s20 = sshll.u32 (!%p2119_p7), %s382_s8, 3  ;;  %s383_s15 = scalar_lea.sflag (!%p2119_p7), [#allocation4], %s382_s8 }
  0xad   : > { %s386_s22 = scalar_lea.vmem [#allocation3], %s1845_s20 }
  0xae   : > { %1398 = dma.done.wait (%p2122_p12), %s383_s15, 128  }
  0xaf   : > { %1400 = vsyncadd (%p2122_p12), %s383_s15, 4294967168  ;;  %s2123_s18 = sld [smem:[#allocation17_spill]]  ;;  %s391_s26 = sand.u32 1, %s1666_s10  }
  0xb0   : > { %s392_s5 = scalar_lea.sflag [#allocation7], %s391_s26  ;;  %p2124_p5 = scmp.ne.s32.totalorder %s2106_s4, 0 }
  0xb5   : > { %s393_s28 = sand.u32 1, %s2123_s18  }
  0xb6   : > { %s922_s17 = sshll.u32 %s393_s28, 7 }
  0xb7   : > { %s1854_s23 = scalar_lea.vmem [#allocation6], %s922_s17 }
  0xb8   : > { %1402 = dma.done.wait (%p2124_p5), %s392_s5, 4096  }
  0xb9   : > { %1404 = vsyncadd (%p2124_p5), %s392_s5, 4294963200  ;;  %s1860_s16 = scalar_lea.vmem [#allocation8], %s922_s17  ;;  %s410_s27 = scalar_lea.sflag [#allocation10], %s393_s28 }
  0xba   : > { %s1862_s30 = scalar_lea.vmem [#allocation9], %s922_s17 }
  0xbb   : > { %1406 = dma.done.wait (%p2124_p5), %s410_s27, 2048  }
  0xbc   : > { %1408 = vsyncadd (%p2124_p5), %s410_s27, 4294965248  ;;  %s2125_s10 = sld [smem:[#allocation21_spill]]  ;;  %s465_s13 = sand.u32 1, %s1419_s25  }
  0xbd   : > { %s1872_s19 = sshll.u32 %s465_s13, 3  ;;  %s2126_s12 = sld [smem:[#allocation31_spill]] }
  0xbe   : > { %s2127_s8 = sld [smem:[#allocation32_spill]]  ;;  %s2128_s28 = sld [smem:[#allocation33_spill]] }
  0xbf   : > { %s467_s5 = scalar_lea.vmem [#allocation11], %s1872_s19  ;;  %s2129_s27 = sld [smem:[#allocation20_spill]] }
  0xc2   : > { %p471_p6 = scmp.lt.s32.totalorder %s2125_s10, 2 }
  0xc4   : > { %s2163_s10 = smov (!%p471_p6, %s2125_s10), 2 }
  0xc5   : > { %s473_s4 = scalar_lea.vmem %s2126_s12, %s2163_s10  ;;  %s476_s15 = scalar_lea.vmem %s2127_s8, %s2163_s10 }
  0xc6   : > { %s479_s17 = scalar_lea.vmem %s2128_s28, %s2163_s10  ;;  %p926_p10 = scmp.ne.s32.totalorder %s2129_s27, 0 }
  0xc7   : > { %v1476_v0 = vmov (!%p926_p10), 0.0  }
  0xc8   : > { %483 = sbr.rel (%p926_p10) target bundleno = 207 (0xcf), region = 68  ;;  %484 = vst [vmem:[#allocation2] sm:$0xff] (!%p926_p10), %v1476_v0 }
  0xcf PF: > { %v485_v1 = vld [vmem:[%s1860_s16] sm:$0xff]  ;;  %v486_v2 = vld [vmem:[%s1860_s16 + $0x8] sm:$0xff]  ;;  %v1477_v3 = vmov 0.0|0.0   ;;  %vm1478_vm0 = vmmov 0   ;;  %v1479_v6 = vmov 0.0   ;;  %v487_v7 = vld [vmem:[%s1860_s16 + $0x10] sm:$0xff] }
  0xd0   : > { %987 = vmatprep.subr.bf16.mxu0 %v1477_v3  ;;  %v501_v4 = vmul.f32 0.5, %v485_v1  ;;  %v502_v5 = vmul.f32 0.5, %v486_v2  ;;  %984 = vmatprep.mubr.msk.f32.mxu0 %vm1478_vm0, %v1479_v6  ;;  %v488_v8 = vld [vmem:[%s1860_s16 + $0x18] sm:$0xff]  ;;  %v503_v11 = vmul.f32 0.5, %v487_v7  ;;  %v489_v15 = vld [vmem:[%s1860_s16 + $0x20] sm:$0xff]  ;;  %v490_v16 = vld [vmem:[%s1860_s16 + $0x28] sm:$0xff] }
  0xd1   : > { %v504_v12 = vmul.f32 0.5, %v488_v8  ;;  %v505_v17 = vmul.f32 0.5, %v489_v15  ;;  %v506_v18 = vmul.f32 0.5, %v490_v16  ;;  %v491_v21 = vld [vmem:[%s1860_s16 + $0x30] sm:$0xff]  ;;  %v492_v22 = vld [vmem:[%s1860_s16 + $0x38] sm:$0xff]  ;;  %v565_v23 = vld [vmem:[%s1862_s30] sm:$0xff] }
  0xd2   : > { %v517_v9 = vmul.f32 1.442695, %v501_v4  ;;  %v519_v10 = vmul.f32 1.442695, %v502_v5  ;;  %v521_v13 = vmul.f32 1.442695, %v503_v11 }
  0xd3   : > { %v523_v14 = vmul.f32 1.442695, %v504_v12  ;;  %v525_v19 = vmul.f32 1.442695, %v505_v17  ;;  %v527_v20 = vmul.f32 1.442695, %v506_v18 }
  0xd4   : > { %1159 = vpow2.f32 %v517_v9  ;;  %v507_v24 = vmul.f32 0.5, %v491_v21  ;;  %v566_v25 = vld [vmem:[%s1862_s30 + $0x8] sm:$0xff]  ;;  %v508_v26 = vmul.f32 0.5, %v492_v22  ;;  %v549_v28 = vld [vmem:[%s1854_s23] sm:$0xff]  ;;  %v567_v32 = vld [vmem:[%s1862_s30 + $0x10] sm:$0xff] }
  0xd5   : > { %1161 = vpow2.f32 %v519_v10  ;;  %v550_v30 = vld [vmem:[%s1854_s23 + $0x8] sm:$0xff]  ;;  %v568_v33 = vld [vmem:[%s1862_s30 + $0x18] sm:$0xff]  ;;  %v493_v40 = vld [vmem:[%s1860_s16 + $0x40] sm:$0xff] }
  0xd6   : > { %1163 = vpow2.f32 %v521_v13  ;;  %v529_v36 = vmul.f32 1.442695, %v507_v24  ;;  %v531_v39 = vmul.f32 1.442695, %v508_v26  ;;  %v494_v44 = vld [vmem:[%s1860_s16 + $0x48] sm:$0xff]  ;;  %v551_v45 = vld [vmem:[%s1854_s23 + $0x10] sm:$0xff] }
  0xd7   : > { %1165 = vpow2.f32 %v523_v14  ;;  %v552_v46 = vld [vmem:[%s1854_s23 + $0x18] sm:$0xff]  ;;  %v509_v48 = vmul.f32 0.5, %v493_v40  ;;  %v510_v49 = vmul.f32 0.5, %v494_v44  ;;  %v569_v54 = vld [vmem:[%s1862_s30 + $0x20] sm:$0xff]  ;;  %v570_v55 = vld [vmem:[%s1862_s30 + $0x28] sm:$0xff] }
  0xd8   : > { %1167 = vpow2.f32 %v525_v19  ;;  %v495_v58 = vld [vmem:[%s1860_s16 + $0x50] sm:$0xff]  ;;  %v496_v62 = vld [vmem:[%s1860_s16 + $0x58] sm:$0xff]  ;;  %v553_v63 = vld [vmem:[%s1854_s23 + $0x20] sm:$0xff] }
  0xd9   : > { %1169 = vpow2.f32 %v527_v20  ;;  %v533_v56 = vmul.f32 1.442695, %v509_v48  ;;  %v535_v57 = vmul.f32 1.442695, %v510_v49  ;;  %v554_v0 = vld [vmem:[%s1854_s23 + $0x28] sm:$0xff]  ;;  %v511_v1 = vmul.f32 0.5, %v495_v58 }
  0xda   : > { %1171 = vpow2.f32 %v529_v36  ;;  %v512_v2 = vmul.f32 0.5, %v496_v62  ;;  %v571_v8 = vld [vmem:[%s1862_s30 + $0x30] sm:$0xff]  ;;  %v572_v9 = vld [vmem:[%s1862_s30 + $0x38] sm:$0xff]  ;;  %v497_v12 = vld [vmem:[%s1860_s16 + $0x60] sm:$0xff] }
  0xdb   : > { %1173 = vpow2.f32 %v531_v39  ;;  %v537_v10 = vmul.f32 1.442695, %v511_v1  ;;  %v498_v16 = vld [vmem:[%s1860_s16 + $0x68] sm:$0xff]  ;;  %v555_v17 = vld [vmem:[%s1854_s23 + $0x30] sm:$0xff]  ;;  %v556_v18 = vld [vmem:[%s1854_s23 + $0x38] sm:$0xff]  ;;  %v513_v19 = vmul.f32 0.5, %v497_v12 }
  0xdc   : > { %1175 = vpow2.f32 %v533_v56  ;;  %v539_v11 = vmul.f32 1.442695, %v512_v2  ;;  %v514_v20 = vmul.f32 0.5, %v498_v16  ;;  %v574_v26 = vld [vmem:[%s1862_s30 + $0x48] sm:$0xff]  ;;  %v559_v49 = vld [vmem:[%s1854_s23 + $0x50] sm:$0xff] }
  0xdd   : > { %1177 = vpow2.f32 %v535_v57  ;;  %v578_v56 = vld [vmem:[%s1862_s30 + $0x68] sm:$0xff]  ;;  %v579_v2 = vld [vmem:[%s1862_s30 + $0x70] sm:$0xff] }
  0xde   : > { %v1160_v27 = vpop.eup %1159  ;;  %1179 = vpow2.f32 %v537_v10 }
  0xdf   : > { %v1162_v29 = vpop.eup %1161  ;;  %v581_v31 = vmul.f32 %v1160_v27, %v565_v23  ;;  %1181 = vpow2.f32 %v539_v11  ;;  %v541_v27 = vmul.f32 1.442695, %v513_v19 }
  0xe0   : > { %v1164_v34 = vpop.eup %1163  ;;  %v582_v35 = vmul.f32 %v1162_v29, %v566_v25  ;;  %v573_v25 = vld [vmem:[%s1862_s30 + $0x40] sm:$0xff]  ;;  %v499_v29 = vld [vmem:[%s1860_s16 + $0x70] sm:$0xff] }
  0xe1   : > { %v1166_v37 = vpop.eup %1165  ;;  %v597_v38 = vadd.f32 %v581_v31, %v549_v28  ;;  %v583_v42 = vmul.f32 %v1164_v34, %v567_v32  ;;  %v543_v28 = vmul.f32 1.442695, %v514_v20  ;;  %v557_v34 = vld [vmem:[%s1854_s23 + $0x40] sm:$0xff]  ;;  %1183 = vpow2.f32 %v541_v27 }
  0xe2   : > { %v598_v41 = vadd.f32 %v582_v35, %v550_v30  ;;  %v584_v43 = vmul.f32 %v1166_v37, %v568_v33  ;;  %v1168_v50 = vpop.eup %1167  ;;  %v500_v33 = vld [vmem:[%s1860_s16 + $0x78] sm:$0xff]  ;;  %v558_v35 = vld [vmem:[%s1854_s23 + $0x48] sm:$0xff]  ;;  %v515_v36 = vmul.f32 0.5, %v499_v29  ;;  %s2130_s16 = sld [smem:[#allocation20_spill]] }
  0xe3   : > { %v599_v51 = vadd.f32 %v583_v42, %v551_v45  ;;  %v1170_v53 = vpop.eup %1169  ;;  %v585_v60 = vmul.f32 %v1168_v50, %v569_v54  ;;  %1185 = vpow2.f32 %v543_v28  ;;  %v516_v37 = vmul.f32 0.5, %v500_v33  ;;  %v575_v42 = vld [vmem:[%s1862_s30 + $0x50] sm:$0xff]  ;;  %v560_v50 = vld [vmem:[%s1854_s23 + $0x58] sm:$0xff] }
  0xe4   : > { %v988_v47 = vpack.c.bf16 %v598_v41, %v597_v38  ;;  %v600_v52 = vadd.f32 %v584_v43, %v552_v46  ;;  %v586_v61 = vmul.f32 %v1170_v53, %v570_v55  ;;  %v1172_v4 = vpop.eup %1171  ;;  %v576_v43 = vld [vmem:[%s1862_s30 + $0x58] sm:$0xff]  ;;  %v545_v44 = vmul.f32 1.442695, %v515_v36  ;;  %v577_v55 = vld [vmem:[%s1862_s30 + $0x60] sm:$0xff] }
  0xe5   : > { %v601_v5 = vadd.f32 %v585_v60, %v553_v63  ;;  %v1174_v7 = vpop.eup %1173  ;;  %v587_v14 = vmul.f32 %v1172_v4, %v571_v8  ;;  %v547_v45 = vmul.f32 1.442695, %v516_v37  ;;  %v561_v60 = vld [vmem:[%s1854_s23 + $0x60] sm:$0xff]  ;;  %v580_v4 = vld [vmem:[%s1862_s30 + $0x78] sm:$0xff]  ;;  %v563_v8 = vld [vmem:[%s1854_s23 + $0x70] sm:$0xff] }
  0xe6   : > { %989 = vmatpush3.bf16.xpose.msra.mxu0 %v988_v47  ;;  %v991_v59 = vpack.c.bf16 %v600_v52, %v599_v51  ;;  %v602_v6 = vadd.f32 %v586_v61, %v554_v0  ;;  %v588_v15 = vmul.f32 %v1174_v7, %v572_v9  ;;  %v1176_v21 = vpop.eup %1175  ;;  %1187 = vpow2.f32 %v545_v44  ;;  %v562_v61 = vld [vmem:[%s1854_s23 + $0x68] sm:$0xff]  ;;  %v564_v9 = vld [vmem:[%s1854_s23 + $0x78] sm:$0xff] }
  0xe7   : > { %990 = vmatprep.subr.bf16.mxu0 %v1477_v3  ;;  %v603_v22 = vadd.f32 %v587_v14, %v555_v17  ;;  %v1178_v24 = vpop.eup %1177  ;;  %v589_v31 = vmul.f32 %v1176_v21, %v573_v25  ;;  %1189 = vpow2.f32 %v547_v45  ;;  %v613_v14 = vld [vmem:[#allocation2] sm:$0xff] }
  0xe8   : > { %v994_v13 = vpack.c.bf16 %v602_v6, %v601_v5  ;;  %v604_v23 = vadd.f32 %v588_v15, %v556_v18  ;;  %v590_v32 = vmul.f32 %v1178_v24, %v574_v26  ;;  %v1180_v38 = vpop.eup %1179  ;;  %p927_p9 = scmp.ne.s32.totalorder %s2130_s16, 1 }
  0xe9   : > { %v605_v39 = vadd.f32 %v589_v31, %v557_v34  ;;  %v1182_v41 = vpop.eup %1181  ;;  %v591_v47 = vmul.f32 %v1180_v38, %v575_v42  ;;  %v701_v20 = vlaneseq (!%p927_p9)  ;;  %v695_v24 = vld [vmem:[%s473_s4] sm:$0x1] (!%p927_p9) }
  0xea   : > { %v997_v30 = vpack.c.bf16 %v604_v23, %v603_v22  ;;  %v606_v40 = vadd.f32 %v590_v32, %v558_v35  ;;  %v592_v48 = vmul.f32 %v1182_v41, %v576_v43  ;;  %v696_v22 = vld [vmem:[%s479_s17] sm:$0x1] (!%p927_p9) }
  0xeb   : > { %v1184_v51 = vpop.eup %1183  ;;  %v607_v52 = vadd.f32 %v591_v47, %v559_v49  ;;  %v702_v21 = vshrl.u32 (!%p927_p9), %v701_v20, 7 }
  0xec   : > { %v1000_v46 = vpack.c.bf16 %v606_v40, %v605_v39  ;;  %v608_v53 = vadd.f32 %v592_v48, %v560_v50  ;;  %v593_v58 = vmul.f32 %v1184_v51, %v577_v55 }
  0xed   : > { %v1186_v54 = vpop.eup %1185  ;;  %v703_v26 = vsub.s32 (!%p927_p9), 0, %v702_v21 }
  0xee   : > { %992 = vmatpush3.bf16.xpose.msra.mxu0 %v991_v59  ;;  %v1003_v57 = vpack.c.bf16 %v608_v53, %v607_v52  ;;  %v594_v59 = vmul.f32 %v1186_v54, %v578_v56  ;;  %v609_v63 = vadd.f32 %v593_v58, %v561_v60 }
  0xef   : > { %993 = vmatprep.subr.bf16.mxu0 %v1477_v3 }
  0xf0   : > { %v1188_v62 = vpop.eup %1187  ;;  %v610_v0 = vadd.f32 %v594_v59, %v562_v61 }
  0xf1   : > { %v1190_v1 = vpop.eup %1189  ;;  %v595_v6 = vmul.f32 %v1188_v62, %v579_v2 }
  0xf2   : > { %v1006_v5 = vpack.c.bf16 %v610_v0, %v609_v63  ;;  %v596_v7 = vmul.f32 %v1190_v1, %v580_v4 }
  0xf3   : > { %v611_v10 = vadd.f32 %v595_v6, %v563_v8 }
  0xf4   : > { %v612_v11 = vadd.f32 %v596_v7, %v564_v9 }
  0xf6   : > { %995 = vmatpush3.bf16.xpose.msra.mxu0 %v994_v13  ;;  %v1009_v12 = vpack.c.bf16 %v612_v11, %v611_v10  ;;  %v614_v13 = vld [vmem:[%s386_s22] sm:$0xff] }
  0xf7   : > { %996 = vmatprep.subr.bf16.mxu0 %v1477_v3 }
  0xfe   : > { %998 = vmatpush3.bf16.xpose.msra.mxu0 %v997_v30 }
  0xff   : > { %999 = vmatprep.subr.bf16.mxu0 %v1477_v3 }
 0x106   : > { %1001 = vmatpush3.bf16.xpose.msra.mxu0 %v1000_v46 }
 0x107   : > { %1002 = vmatprep.subr.bf16.mxu0 %v1477_v3 }
 0x10e   : > { %1004 = vmatpush3.bf16.xpose.msra.mxu0 %v1003_v57 }
 0x10f   : > { %1005 = vmatprep.subr.bf16.mxu0 %v1477_v3 }
 0x116   : > { %1007 = vmatpush3.bf16.xpose.msra.mxu0 %v1006_v5 }
 0x117   : > { %1008 = vmatprep.subr.bf16.mxu0 %v1477_v3  ;;  %v691_v3 = vld [vmem:[%s476_s15] sm:$0x1] (!%p927_p9) }
 0x118   : > { %v692_v18 = vmul.f32 (!%p927_p9), 0.5, %v691_v3 }
 0x11a   : > { %v693_v19 = vmul.f32 (!%p927_p9), 1.442695, %v692_v18 }
 0x11c   : > { %1191 = vpow2.f32 (!%p927_p9), %v693_v19 }
 0x11e   : > { %1010 = vmatpush3.bf16.xpose.msra.mxu0 %v1009_v12 }
 0x125   : > { %985 = vmatmul.mubr.f32.vlgmr.msra.gmra.mrb[0].mxu0 %v614_v13 }
 0x126   : > { %v1192_v23 = vpop.eup (!%p927_p9), %1191 }
 0x127   : > { %v697_v25 = vmul.f32 (!%p927_p9), %v1192_v23, %v696_v22 }
 0x129   : > { %v698_v27 = vadd.f32 (!%p927_p9), %v697_v25, %v695_v24 }
 0x12b   : > { %v704_v29 = vrot.slane (!%p927_p9), %v698_v27, %v703_v26 }
 0x1f5   : > { %690 = sbr.rel (%p927_p9) target bundleno = 518 (0x206), region = 72 }
 0x1f8   : > { %v681_v15 = vpop.f32.mrb[0].mxu0 }
 0x1f9   : > { %v685_v16 = vadd.f32 %v681_v15, %v613_v14  ;;  %v986_v17 = vpop.f32.mrb[1].mxu0 }
 0x1fb   : > { %686 = vst [vmem:[#allocation2] sm:$0xff] %v685_v16 }
 0x202   : > { %v699_v28 = vld [vmem:[#allocation2] sm:$0xff] }
 0x203   : > { %v706_v30 = vadd.f32 %v704_v29, %v699_v28 }
 0x205   : > { %707 = vst [vmem:[%s467_s5] sm:$0xff] %v706_v30 }
 0x206 PF: > { %s2134_s8 = sld [smem:[#allocation21_spill]]  ;;  %s2135_s28 = sld [smem:[#allocation34_spill]] }
 0x207   : > { %s722_s10 = sshll.u32 %s467_s5, 4  ;;  %s709_s4 = scalar_lea.sflag [#allocation5], %s465_s13  ;;  %s723_s10 = int_to_ptr.vmem [resolvable:$true] %s722_s10 }
 0x208   : > { %s1313_s16 = scalar_lea.vmem %s723_s10, 128  ;;  %p2137_p11 = scmp.ne.s32.totalorder %s2110_s1, 0 }
 0x209   : > { %p1314_p1 = scmp.ne.s32.totalorder %s723_s10, %s1313_s16  ;;  %s1480_s30 = smov [#allocation11]  }
 0x20a   : > { %s1317_s23 = sshll.u32 %s1480_s30, 4  ;;  %s1318_s23 = int_to_ptr.vmem [resolvable:$false] %s1317_s23 }
 0x20b   : > { %p1315_p4 = pnand %p1314_p1, %p2137_p11  ;;  %s1319_s21 = scalar_lea.vmem %s1318_s23, 256 }
 0x20c   : > { %s929_s15 = sshll.u32 %s2134_s8, 7  ;;  %s2136_s17 = smov %s2135_s28 }
 0x20d   : > { %s1971_s27 = scalar_lea.hbm %s2135_s28, %s929_s15  ;;  %p1316_p2 = pneg %p1315_p4 }
 0x20e   : > { %p1320_p0 = scmp.lt.s32.totalorder %s723_s10, %s1318_s23  ;;  %p1321_p3 = scmp.lt.s32.totalorder %s1319_s21, %s1313_s16 }
 0x210   : > { %p1322_p8 = por %p1321_p3, %p1320_p0 }
 0x212   : > { %p1323_p13 = pnand %p1322_p8, %p1316_p2 }
 0x214   : > { %1326 = shalt.err (!%p1323_p13)
}
 0x215   : > { %s1327_s13 = scalar_lea.hbm %s1971_s27, 128  ;;  %s1331_s20 = scalar_lea.hbm %s2136_s17, 384 }
 0x216   : > { %p1328_p7 = scmp.ne.s32.totalorder %s1971_s27, %s1327_s13  ;;  %p1332_p6 = scmp.lt.u32.totalorder %s1971_s27, %s2136_s17 }
 0x217   : > { %p1333_p10 = scmp.lt.u32.totalorder %s1331_s20, %s1327_s13  ;;  %p1335_p1 = scmp.lt.u32.totalorder %s1327_s13, %s1971_s27 }
 0x218   : > { %p1329_p12 = pnand %p1328_p7, %p2137_p11 }
 0x219   : > { %p1334_p9 = por %p1333_p10, %p1332_p6 }
 0x21a   : > { %p1330_p5 = pneg %p1329_p12 }
 0x21b   : > { %p1336_p4 = por %p1335_p1, %p1334_p9 }
 0x21d   : > { %p1337_p2 = pnand %p1336_p4, %p1330_p5 }
 0x21f   : > { %1340 = shalt.err (!%p1337_p2)
}
 0x220   : > { %1019 = dma.vmem_to_hbm [thread:$0]  (%p2137_p11), %s723_s10, 128, %s1971_s27, %s709_s4  }
 0x221 PF: > { %p1039_p0 = scmp.ge.s32.totalorder %s1467_s14, 2  ;;  %s734_s12 = sand.u32 1, %s1415_s24  }
 0x222   : > { %p2138_p3 = scmp.ne.s32.totalorder %s2111_s11, 0  ;;  %s735_s7 = scalar_lea.sflag [#allocation5], %s734_s12 }
 0x224   : > { %p1035_p8 = pnand %p1039_p0, %p2138_p3 }
 0x226   : > { %1410 = dma.done.wait (!%p1035_p8), %s735_s7, 128  }
 0x227   : > { %1412 = vsyncadd (!%p1035_p8), %s735_s7, 4294967168  ;;  %s29_s14 = sadd.s32 1, %s1467_s14   ;;  %s2140_s1 = sld [smem:[#allocation16_spill]] }
 0x228   : > { %p1999_p13 = scmp.ge.s32.totalorder %s29_s14, 8   ;;  %s2141_s26 = sld [smem:[#allocation28_spill]] }
 0x229   : > { %s2142_s27 = sld [smem:[#allocation17_spill]]  ;;  %s2143_s8 = sld [smem:[#allocation29_spill]] }
 0x22a   : > { %s2144_s30 = sld [smem:[#allocation18_spill]]  ;;  %s2145_s15 = sld [smem:[#allocation19_spill]] }
 0x22b   : > { %s2146_s9 = sld [smem:[#allocation27_spill]]  ;;  %s2147_s10 = sld [smem:[#allocation22_spill]] }
 0x22c   : > { %s2148_s11 = sld [smem:[#allocation23_spill]]  ;;  %s2149_s12 = sld [smem:[#allocation24_spill]] }
 0x22d   : > { %s2150_s13 = sld [smem:[#allocation26_spill]]  ;;  %s2151_s24 = smov %s1419_s25 }
 0x22e   : > { %s2152_s25 = smov %s2140_s1  ;;  %s2153_s28 = smov %s1435_s29 }
 0x22f   : > { %s2154_s29 = smov %s2143_s8  ;;  %28 = sbr.rel (!%p1999_p13) target bundleno = 20 (0x14), region = 147 }
 0x230   : > { %s2155_s8 = smov %s2145_s15 }
 0x236   :  { %740 = vsyncpa [#allocation4], 1 }
 0x237   :  { %742 = vsyncpa [#allocation4 + $0x1], 1 }
 0x238   :  { %743 = vsyncpa [#allocation7], 1 }
 0x239   :  { %745 = vsyncpa [#allocation7 + $0x1], 1 }
 0x23a   :  { %746 = vsyncpa [#allocation10], 1 }
 0x23b   :  { %748 = vsyncpa [#allocation10 + $0x1], 1 }
 0x23c   :  { %749 = vsyncpa [#allocation5], 1 }
 0x23d   :  { %751 = vsyncpa [#allocation5 + $0x1], 1 }

</bundles_post_ra>
